<compile_context>
chip_gen: v5e
topology: v5e:2x2
jax: 0.10.0
libtpu: 0.0.40
codegen_flags: <defaults>
</compile_context>

<pallas_src>
from functools import partial

import jax
import jax.numpy as jnp
from jax.experimental import pallas as pl
from jax.experimental.pallas import tpu as pltpu


def _round_up(x, m):
    return ((x + m - 1) // m) * m


# --------------------------------------------------------------------------- #
# Kernel                                                                      #
# --------------------------------------------------------------------------- #
def _decoder_rnn_kernel(tok_ref,      # SMEM (T,)      int32 token ids (scalar prefetch)
                        emb_ref,      # VMEM (1, Hp)   gathered embedding row for step t
                        h0_ref,       # VMEM (1, Hp)   initial hidden
                        w_g_ref,      # VMEM (2Hp,4Hp) fused GRU weights [r|z|i_n|h_n]
                        b_g_ref,      # VMEM (1, 4Hp)  fused GRU bias
                        w_lin_ref,    # VMEM (Hp, Vp)  linear weights (transposed)
                        b_lin_ref,    # VMEM (1, Vp)   linear bias
                        logits_ref,   # VMEM (1, Vp)   per-step logits (output)
                        h_out_ref,    # VMEM (1, Hp)   final hidden (output)
                        h_scr):       # VMEM (1, Hp)   carried hidden (scratch)
    del tok_ref  # consumed by the embedding-row index_map only
    t = pl.program_id(0)
    Hp = h_scr.shape[-1]

    @pl.when(t == 0)
    def _():
        h_scr[...] = h0_ref[...]

    x = emb_ref[...]          # (1, Hp)
    h = h_scr[...]            # (1, Hp)

    # One fused MXU matmul: columns = [i_r+h_r | i_z+h_z | i_n | h_n], biases
    # pre-summed per block, gate boundaries on 128-lane edges (no cross-lane work).
    lhs = jnp.concatenate([x, h], axis=-1)                       # (1, 2Hp)
    g = jnp.dot(lhs, w_g_ref[...],
                preferred_element_type=jnp.float32) + b_g_ref[...]

    r = jax.nn.sigmoid(g[:, 0:Hp])
    z = jax.nn.sigmoid(g[:, Hp:2 * Hp])
    n = jnp.tanh(g[:, 2 * Hp:3 * Hp] + r * g[:, 3 * Hp:4 * Hp])
    h_new = (1.0 - z) * n + z * h

    h_scr[...] = h_new
    logits_ref[...] = (jnp.dot(h_new, w_lin_ref[...],
                               preferred_element_type=jnp.float32)
                       + b_lin_ref[...])

    @pl.when(t == pl.num_programs(0) - 1)
    def _():
        h_out_ref[...] = h_new


# --------------------------------------------------------------------------- #
# One-time parameter preparation (transpose / fuse / lane-pad)                #
# --------------------------------------------------------------------------- #
def prepare_params(params):
    emb = jnp.asarray(params["emb"], jnp.float32)       # (V, H)
    w_ih = jnp.asarray(params["w_ih"], jnp.float32)     # (3H, H), gates r,z,n
    w_hh = jnp.asarray(params["w_hh"], jnp.float32)     # (3H, H)
    b_ih = jnp.asarray(params["b_ih"], jnp.float32)     # (3H,)
    b_hh = jnp.asarray(params["b_hh"], jnp.float32)     # (3H,)
    w_lin = jnp.asarray(params["w_lin"], jnp.float32)   # (V, H)
    b_lin = jnp.asarray(params["b_lin"], jnp.float32)   # (V,)

    V, H = emb.shape
    Hp = _round_up(H, 128)
    Vp = _round_up(V, 128)

    def pad2(a, shape):
        return jnp.zeros(shape, jnp.float32).at[: a.shape[0], : a.shape[1]].set(a)

    def pad1(b):
        return jnp.zeros((Hp,), jnp.float32).at[: b.shape[0]].set(b)

    # Embedding rows padded to Hp lanes; extra middle axis of size 1 keeps the
    # per-row block (1, Hp) equal to the full trailing dims (clean TPU tiling).
    emb_p = pad2(emb, (V, Hp)).reshape(V, 1, Hp)

    W_ir, W_iz, W_in = w_ih[0:H], w_ih[H:2 * H], w_ih[2 * H:3 * H]
    W_hr, W_hz, W_hn = w_hh[0:H], w_hh[H:2 * H], w_hh[2 * H:3 * H]

    zHH = jnp.zeros((Hp, Hp), jnp.float32)
    top = jnp.concatenate([pad2(W_ir.T, (Hp, Hp)), pad2(W_iz.T, (Hp, Hp)),
                           pad2(W_in.T, (Hp, Hp)), zHH], axis=1)
    bot = jnp.concatenate([pad2(W_hr.T, (Hp, Hp)), pad2(W_hz.T, (Hp, Hp)),
                           zHH, pad2(W_hn.T, (Hp, Hp))], axis=1)
    w_gates = jnp.concatenate([top, bot], axis=0)        # (2Hp, 4Hp)

    b_gates = jnp.concatenate([pad1(b_ih[0:H] + b_hh[0:H]),
                               pad1(b_ih[H:2 * H] + b_hh[H:2 * H]),
                               pad1(b_ih[2 * H:3 * H]),
                               pad1(b_hh[2 * H:3 * H])]).reshape(1, 4 * Hp)

    w_lin_t = pad2(w_lin.T, (Hp, Vp))                    # (Hp, Vp)
    b_lin_p = jnp.zeros((1, Vp), jnp.float32).at[0, :V].set(b_lin)

    return {"emb": emb_p, "w_gates": w_gates, "b_gates": b_gates,
            "w_lin_t": w_lin_t, "b_lin": b_lin_p}


# --------------------------------------------------------------------------- #
# Forward: T fused decode steps in a single pallas_call (T=1 == module forward)#
# --------------------------------------------------------------------------- #
@partial(jax.jit, static_argnames=("hidden_size", "output_size"))
def decoder_rnn_forward(tokens, hidden, prep, *, hidden_size, output_size):
    """tokens: (T,) int32; hidden: (1, 1, hidden_size) float32.

    Returns (logits (T, 1, output_size), hidden (1, 1, hidden_size)); each step t
    is numerically the PyTorch module's forward applied to tokens[t].
    """
    H, V = hidden_size, output_size
    Hp, Vp = prep["w_lin_t"].shape
    T = tokens.shape[0]

    # Guard against out-of-range ids (BlockSpec gather has no runtime OOB check).
    tokens = jnp.clip(tokens.astype(jnp.int32).reshape(T), 0, prep["emb"].shape[0] - 1)
    h0 = jnp.zeros((1, Hp), jnp.float32).at[:, :H].set(
        hidden.reshape(1, H).astype(jnp.float32))

    grid_spec = pltpu.PrefetchScalarGridSpec(
        num_scalar_prefetch=1,
        grid=(T,),
        in_specs=[
            # One embedding row per step, gathered via the prefetched token id.
            pl.BlockSpec((None, 1, Hp), lambda t, tok: (tok[t], 0, 0)),
            pl.BlockSpec((1, Hp), lambda t, tok: (0, 0)),            # h0
            pl.BlockSpec((2 * Hp, 4 * Hp), lambda t, tok: (0, 0)),   # fused GRU W (resident)
            pl.BlockSpec((1, 4 * Hp), lambda t, tok: (0, 0)),        # fused GRU b
            pl.BlockSpec((Hp, Vp), lambda t, tok: (0, 0)),           # linear W (resident)
            pl.BlockSpec((1, Vp), lambda t, tok: (0, 0)),            # linear b
        ],
        out_specs=(
            pl.BlockSpec((None, 1, Vp), lambda t, tok: (t, 0, 0)),   # per-step logits
            pl.BlockSpec((1, Hp), lambda t, tok: (0, 0)),            # final hidden
        ),
        scratch_shapes=[pltpu.VMEM((1, Hp), jnp.float32)],           # carried hidden
    )

    param_bytes = 4 * (prep["w_gates"].size + prep["b_gates"].size
                       + prep["w_lin_t"].size + prep["b_lin"].size)
    io_bytes = 4 * (T * (Hp + Vp) + 2 * Hp)
    cost = pl.CostEstimate(flops=2 * T * (2 * Hp * 4 * Hp + Hp * Vp),
                           transcendentals=3 * T * Hp,
                           bytes_accessed=int(param_bytes + io_bytes))

    logits_p, h_out_p = pl.pallas_call(
        _decoder_rnn_kernel,
        out_shape=(jax.ShapeDtypeStruct((T, 1, Vp), jnp.float32),
                   jax.ShapeDtypeStruct((1, Hp), jnp.float32)),
        grid_spec=grid_spec,
        # Recurrence -> the grid axis is sequential.
        compiler_params=pltpu.CompilerParams(dimension_semantics=("arbitrary",)),
        # Alias the padded incoming hidden onto the hidden output
        # (operand indices count the scalar-prefetch arg: tok=0, emb=1, h0=2).
        input_output_aliases={2: 1},
        cost_estimate=cost,
    )(tokens, prep["emb"], h0, prep["w_gates"], prep["b_gates"],
      prep["w_lin_t"], prep["b_lin"])

    return logits_p[:, :, :V], h_out_p[:, :H].reshape(1, 1, H)


# --------------------------------------------------------------------------- #
# Pure-JAX reference (PyTorch GRU semantics, one step)                        #
# --------------------------------------------------------------------------- #
def _reference_step(tok, h, params):
    H = params["emb"].shape[1]
    x = params["emb"][tok].reshape(1, H)
    gi = x @ params["w_ih"].T + params["b_ih"]
    gh = h @ params["w_hh"].T + params["b_hh"]
    i_r, i_z, i_n = gi[:, :H], gi[:, H:2 * H], gi[:, 2 * H:]
    h_r, h_z, h_n = gh[:, :H], gh[:, H:2 * H], gh[:, 2 * H:]
    r = jax.nn.sigmoid(i_r + h_r)
    z = jax.nn.sigmoid(i_z + h_z)
    n = jnp.tanh(i_n + r * h_n)
    h_new = (1.0 - z) * n + z * h
    out = h_new @ params["w_lin"].T + params["b_lin"]
    return out, h_new


if __name__ == "__main__":
    HIDDEN = 32
    OUTPUT = 64   # vocab / output_size
    T = 6

    key = jax.random.PRNGKey(0)
    ks = jax.random.split(key, 8)
    scale = 1.0 / jnp.sqrt(HIDDEN)

    params = {
        "emb":   jax.random.uniform(ks[0], (OUTPUT, HIDDEN), jnp.float32, -1.0, 1.0),
        "w_ih":  jax.random.uniform(ks[1], (3 * HIDDEN, HIDDEN), jnp.float32, -scale, scale),
        "w_hh":  jax.random.uniform(ks[2], (3 * HIDDEN, HIDDEN), jnp.float32, -scale, scale),
        "b_ih":  jax.random.uniform(ks[3], (3 * HIDDEN,), jnp.float32, -scale, scale),
        "b_hh":  jax.random.uniform(ks[4], (3 * HIDDEN,), jnp.float32, -scale, scale),
        "w_lin": jax.random.uniform(ks[5], (OUTPUT, HIDDEN), jnp.float32, -scale, scale),
        "b_lin": jax.random.uniform(ks[6], (OUTPUT,), jnp.float32, -scale, scale),
    }

    prep = prepare_params(params)                       # one-time weight prep
    hidden0 = jax.random.normal(ks[7], (1, 1, HIDDEN), jnp.float32)

    # ---- single step: exact PyTorch-module forward semantics ----
    tok = jnp.array([7], dtype=jnp.int32)
    out1, h1 = decoder_rnn_forward(tok, hidden0, prep,
                                   hidden_size=HIDDEN, output_size=OUTPUT)
    out1, h1 = jax.block_until_ready((out1, h1))
    assert out1.shape == (1, 1, OUTPUT) and h1.shape == (1, 1, HIDDEN)
    ref_o, ref_h = _reference_step(7, hidden0.reshape(1, HIDDEN), params)
    assert jnp.allclose(out1.reshape(1, OUTPUT), ref_o, atol=1e-4, rtol=1e-4)
    assert jnp.allclose(h1.reshape(1, HIDDEN), ref_h, atol=1e-4, rtol=1e-4)

    # ---- fused multi-step decode: T steps in one pallas_call ----
    tokens = jnp.array([3, 7, 1, 0, 63, 12], dtype=jnp.int32)
    outs, hT = decoder_rnn_forward(tokens, hidden0, prep,
                                   hidden_size=HIDDEN, output_size=OUTPUT)
    outs, hT = jax.block_until_ready((outs, hT))
    assert outs.shape == (T, 1, OUTPUT) and hT.shape == (1, 1, HIDDEN)

    h_ref = hidden0.reshape(1, HIDDEN)
    for i in range(T):
        o_ref, h_ref = _reference_step(int(tokens[i]), h_ref, params)
        assert jnp.allclose(outs[i].reshape(1, OUTPUT), o_ref, atol=1e-4, rtol=1e-4)
    assert jnp.allclose(hT.reshape(1, HIDDEN), h_ref, atol=1e-4, rtol=1e-4)

    print("KERNEL_OK")
</pallas_src>

<mosaic_0001>
module attributes {stable_mosaic.version = 11 : i64} {
  func.func @_decoder_rnn_kernel(%arg0: i32, %arg1: memref<1xi32, #tpu.memory_space<smem>>, %arg2: memref<1x1x128xf32, #tpu.memory_space<vmem>>, %arg3: memref<1x128xf32, #tpu.memory_space<vmem>>, %arg4: memref<256x512xf32, #tpu.memory_space<vmem>>, %arg5: memref<1x512xf32, #tpu.memory_space<vmem>>, %arg6: memref<128x128xf32, #tpu.memory_space<vmem>>, %arg7: memref<1x128xf32, #tpu.memory_space<vmem>>, %arg8: memref<1x1x128xf32, #tpu.memory_space<vmem>>, %arg9: memref<1x128xf32, #tpu.memory_space<vmem>>, %arg10: memref<1x128xf32, #tpu.memory_space<vmem>>) attributes {dimension_semantics = [#tpu.dimension_semantics<arbitrary>], iteration_bounds = array<i64: 1>, scalar_prefetch = 1 : i64, scratch_operands = 1 : i64, tpu.core_type = #tpu.core_type<tc>, window_params = [{transform_indices = @transform_0, window_bounds = array<i64: 1, 1, 128>}, {pipeline_mode = #tpu.pipeline_mode<synchronous>, transform_indices = @transform_1, window_bounds = array<i64: 1, 128>}, {pipeline_mode = #tpu.pipeline_mode<synchronous>, transform_indices = @transform_2, window_bounds = array<i64: 256, 512>}, {pipeline_mode = #tpu.pipeline_mode<synchronous>, transform_indices = @transform_3, window_bounds = array<i64: 1, 512>}, {pipeline_mode = #tpu.pipeline_mode<synchronous>, transform_indices = @transform_4, window_bounds = array<i64: 128, 128>}, {pipeline_mode = #tpu.pipeline_mode<synchronous>, transform_indices = @transform_5, window_bounds = array<i64: 1, 128>}, {transform_indices = @transform_6, window_bounds = array<i64: 1, 1, 128>}, {pipeline_mode = #tpu.pipeline_mode<synchronous>, transform_indices = @transform_7, window_bounds = array<i64: 1, 128>}]} {
    %c0_i32 = arith.constant 0 : i32
    %0 = arith.cmpi eq, %arg0, %c0_i32 : i32
    %1 = arith.extui %0 : i1 to i32
    %c0_i32_0 = arith.constant 0 : i32
    %2 = arith.cmpi ne, %1, %c0_i32_0 : i32
    scf.if %2 {
      %c0_24 = arith.constant 0 : index
      %c0_25 = arith.constant 0 : index
      %44 = vector.load %arg3[%c0_24, %c0_25] : memref<1x128xf32, #tpu.memory_space<vmem>>, vector<1x128xf32>
      %c0_26 = arith.constant 0 : index
      %c0_27 = arith.constant 0 : index
      %45 = vector.load %arg10[%c0_26, %c0_27] : memref<1x128xf32, #tpu.memory_space<vmem>>, vector<1x128xf32>
      tpu.vector_store %arg10[%c0_26, %c0_27], %44 {strides = array<i32>} : memref<1x128xf32, #tpu.memory_space<vmem>>, vector<1x128xf32>,
    } else {
    }
    %c0 = arith.constant 0 : index
    %c0_1 = arith.constant 0 : index
    %c0_2 = arith.constant 0 : index
    %3 = vector.load %arg2[%c0, %c0_1, %c0_2] : memref<1x1x128xf32, #tpu.memory_space<vmem>>, vector<1x1x128xf32>
    %4 = vector.shape_cast %3 : vector<1x1x128xf32> to vector<1x128xf32>
    %c0_3 = arith.constant 0 : index
    %c0_4 = arith.constant 0 : index
    %5 = vector.load %arg10[%c0_3, %c0_4] : memref<1x128xf32, #tpu.memory_space<vmem>>, vector<1x128xf32>
    %6 = tpu.concatenate %4, %5 in 1 : vector<1x128xf32>, vector<1x128xf32> -> vector<1x256xf32>
    %c0_5 = arith.constant 0 : index
    %c0_6 = arith.constant 0 : index
    %7 = vector.load %arg4[%c0_5, %c0_6] : memref<256x512xf32, #tpu.memory_space<vmem>>, vector<256x512xf32>
    %cst = arith.constant dense<0.000000e+00> : vector<1x512xf32>
    %8 = tpu.matmul %6, %7, %cst {dimension_numbers = #tpu.dot_dimension_numbers<[1], [0], [0], [1], [0, 0, 1, 1], [], []>} : vector<1x256xf32>, vector<256x512xf32>, vector<1x512xf32> -> vector<1x512xf32>
    %c0_7 = arith.constant 0 : index
    %c0_8 = arith.constant 0 : index
    %9 = vector.load %arg5[%c0_7, %c0_8] : memref<1x512xf32, #tpu.memory_space<vmem>>, vector<1x512xf32>
    %10 = arith.addf %8, %9 : vector<1x512xf32>
    %11 = vector.extract_strided_slice %10 {offsets = [0, 0], sizes = [1, 128], strides = [1, 1]} : vector<1x512xf32> to vector<1x128xf32>
    %12 = arith.negf %11 : vector<1x128xf32>
    %13 = math.exp %12 : vector<1x128xf32>
    %cst_9 = arith.constant 1.000000e+00 : f32
    %14 = vector.broadcast %cst_9 : f32 to vector<1x128xf32>
    %15 = arith.addf %14, %13 : vector<1x128xf32>
    %16 = arith.divf %14, %15 : vector<1x128xf32>
    %17 = vector.extract_strided_slice %10 {offsets = [0, 128], sizes = [1, 128], strides = [1, 1]} : vector<1x512xf32> to vector<1x128xf32>
    %18 = arith.negf %17 : vector<1x128xf32>
    %19 = math.exp %18 : vector<1x128xf32>
    %cst_10 = arith.constant 1.000000e+00 : f32
    %20 = vector.broadcast %cst_10 : f32 to vector<1x128xf32>
    %21 = arith.addf %20, %19 : vector<1x128xf32>
    %22 = arith.divf %20, %21 : vector<1x128xf32>
    %23 = vector.extract_strided_slice %10 {offsets = [0, 256], sizes = [1, 128], strides = [1, 1]} : vector<1x512xf32> to vector<1x128xf32>
    %24 = vector.extract_strided_slice %10 {offsets = [0, 384], sizes = [1, 128], strides = [1, 1]} : vector<1x512xf32> to vector<1x128xf32>
    %25 = arith.mulf %16, %24 : vector<1x128xf32>
    %26 = arith.addf %23, %25 : vector<1x128xf32>
    %27 = math.tanh %26 : vector<1x128xf32>
    %cst_11 = arith.constant 1.000000e+00 : f32
    %28 = vector.broadcast %cst_11 : f32 to vector<1x128xf32>
    %29 = arith.subf %28, %22 : vector<1x128xf32>
    %30 = arith.mulf %29, %27 : vector<1x128xf32>
    %31 = arith.mulf %22, %5 : vector<1x128xf32>
    %32 = arith.addf %30, %31 : vector<1x128xf32>
    %c0_12 = arith.constant 0 : index
    %c0_13 = arith.constant 0 : index
    %33 = vector.load %arg10[%c0_12, %c0_13] : memref<1x128xf32, #tpu.memory_space<vmem>>, vector<1x128xf32>
    tpu.vector_store %arg10[%c0_12, %c0_13], %32 {strides = array<i32>} : memref<1x128xf32, #tpu.memory_space<vmem>>, vector<1x128xf32>,
    %c0_14 = arith.constant 0 : index
    %c0_15 = arith.constant 0 : index
    %34 = vector.load %arg6[%c0_14, %c0_15] : memref<128x128xf32, #tpu.memory_space<vmem>>, vector<128x128xf32>
    %cst_16 = arith.constant dense<0.000000e+00> : vector<1x128xf32>
    %35 = tpu.matmul %32, %34, %cst_16 {dimension_numbers = #tpu.dot_dimension_numbers<[1], [0], [0], [1], [0, 0, 1, 1], [], []>} : vector<1x128xf32>, vector<128x128xf32>, vector<1x128xf32> -> vector<1x128xf32>
    %c0_17 = arith.constant 0 : index
    %c0_18 = arith.constant 0 : index
    %36 = vector.load %arg7[%c0_17, %c0_18] : memref<1x128xf32, #tpu.memory_space<vmem>>, vector<1x128xf32>
    %37 = arith.addf %35, %36 : vector<1x128xf32>
    %c0_19 = arith.constant 0 : index
    %c0_20 = arith.constant 0 : index
    %c0_21 = arith.constant 0 : index
    %38 = vector.load %arg8[%c0_19, %c0_20, %c0_21] : memref<1x1x128xf32, #tpu.memory_space<vmem>>, vector<1x1x128xf32>
    %39 = vector.shape_cast %38 : vector<1x1x128xf32> to vector<1x128xf32>
    %40 = vector.shape_cast %37 : vector<1x128xf32> to vector<1x1x128xf32>
    tpu.vector_store %arg8[%c0_19, %c0_20, %c0_21], %40 {strides = array<i32>} : memref<1x1x128xf32, #tpu.memory_space<vmem>>, vector<1x1x128xf32>,
    %c0_i32_22 = arith.constant 0 : i32
    %41 = arith.cmpi eq, %arg0, %c0_i32_22 : i32
    %42 = arith.extui %41 : i1 to i32
    %c0_i32_23 = arith.constant 0 : i32
    %43 = arith.cmpi ne, %42, %c0_i32_23 : i32
    scf.if %43 {
      %c0_24 = arith.constant 0 : index
      %c0_25 = arith.constant 0 : index
      %44 = vector.load %arg9[%c0_24, %c0_25] : memref<1x128xf32, #tpu.memory_space<vmem>>, vector<1x128xf32>
      tpu.vector_store %arg9[%c0_24, %c0_25], %32 {strides = array<i32>} : memref<1x128xf32, #tpu.memory_space<vmem>>, vector<1x128xf32>,
    } else {
    }
    return
  }
  func.func @transform_0(%arg0: i32, %arg1: memref<1xi32, #tpu.memory_space<smem>>) -> (i32, i32, i32) {
    %0 = arith.index_cast %arg0 : i32 to index
    %1 = memref.load %arg1[%0] : memref<1xi32, #tpu.memory_space<smem>>
    %c0_i32 = arith.constant 0 : i32
    %c0_i32_0 = arith.constant 0 : i32
    %c0_i32_1 = arith.constant 0 : i32
    return %1, %c0_i32, %c0_i32_0 : i32, i32, i32
  }
  func.func @transform_1(%arg0: i32, %arg1: memref<1xi32, #tpu.memory_space<smem>>) -> (i32, i32) {
    %c0_i32 = arith.constant 0 : i32
    %c0_i32_0 = arith.constant 0 : i32
    %c0_i32_1 = arith.constant 0 : i32
    return %c0_i32, %c0_i32_0 : i32, i32
  }
  func.func @transform_2(%arg0: i32, %arg1: memref<1xi32, #tpu.memory_space<smem>>) -> (i32, i32) {
    %c0_i32 = arith.constant 0 : i32
    %c0_i32_0 = arith.constant 0 : i32
    %c0_i32_1 = arith.constant 0 : i32
    return %c0_i32, %c0_i32_0 : i32, i32
  }
  func.func @transform_3(%arg0: i32, %arg1: memref<1xi32, #tpu.memory_space<smem>>) -> (i32, i32) {
    %c0_i32 = arith.constant 0 : i32
    %c0_i32_0 = arith.constant 0 : i32
    %c0_i32_1 = arith.constant 0 : i32
    return %c0_i32, %c0_i32_0 : i32, i32
  }
  func.func @transform_4(%arg0: i32, %arg1: memref<1xi32, #tpu.memory_space<smem>>) -> (i32, i32) {
    %c0_i32 = arith.constant 0 : i32
    %c0_i32_0 = arith.constant 0 : i32
    %c0_i32_1 = arith.constant 0 : i32
    return %c0_i32, %c0_i32_0 : i32, i32
  }
  func.func @transform_5(%arg0: i32, %arg1: memref<1xi32, #tpu.memory_space<smem>>) -> (i32, i32) {
    %c0_i32 = arith.constant 0 : i32
    %c0_i32_0 = arith.constant 0 : i32
    %c0_i32_1 = arith.constant 0 : i32
    return %c0_i32, %c0_i32_0 : i32, i32
  }
  func.func @transform_6(%arg0: i32, %arg1: memref<1xi32, #tpu.memory_space<smem>>) -> (i32, i32, i32) {
    %c0_i32 = arith.constant 0 : i32
    %c0_i32_0 = arith.constant 0 : i32
    %c0_i32_1 = arith.constant 0 : i32
    return %arg0, %c0_i32, %c0_i32_0 : i32, i32, i32
  }
  func.func @transform_7(%arg0: i32, %arg1: memref<1xi32, #tpu.memory_space<smem>>) -> (i32, i32) {
    %c0_i32 = arith.constant 0 : i32
    %c0_i32_0 = arith.constant 0 : i32
    %c0_i32_1 = arith.constant 0 : i32
    return %c0_i32, %c0_i32_0 : i32, i32
  }
}

</mosaic_0001>

<bundles_post_ra>
// kernel: decoder_rnn_forward.1
= control target key start
LH: loop header
LB: loop body
LE: loop exit
PB: predicated region body
PF: predicated region fallthrough
CT: control target
= control target key end

     0   :  { %15 = vsyncpa [#allocation6], 0  ;;  %s720_s0 = inlined_call_operand.<no memory space> [shape: s32[1], index: 0, kind: input, shape index: {}]   ;;  %s721_s1 = inlined_call_operand.hbm [shape: f32[64,1,128], index: 1, kind: input, shape index: {}]   ;;  %s722_s2 = inlined_call_operand.vmem [shape: f32[1,128], index: 2, kind: input, shape index: {}, may-alias: {2,8}]   ;;  %s723_s3 = inlined_call_operand.hbm [shape: f32[256,512], index: 3, kind: input, shape index: {}]   ;;  %s724_s4 = inlined_call_operand.vmem [shape: f32[1,512], index: 4, kind: input, shape index: {}]   ;;  %s725_s5 = inlined_call_operand.hbm [shape: f32[128,128], index: 5, kind: input, shape index: {}]   ;;  %s726_s6 = inlined_call_operand.vmem [shape: f32[1,128], index: 6, kind: input, shape index: {}]   ;;  %s727_s7 = inlined_call_operand.hbm [shape: f32[1,1,128], index: 7, kind: output, shape index: {0}]   ;;  %s728_s8 = inlined_call_operand.vmem [shape: f32[1,128], index: 8, kind: output, shape index: {1}, may-alias: {2,8}]  }
   0x1   :  { %16 = vsyncpa [#allocation9], 0  ;;  %s37_s29 = sshll.u32 %s723_s3, 4  ;;  %s38_s29 = int_to_ptr.hbm [resolvable:$true] %s37_s29 }
   0x2   :  { %17 = vsyncpa [#allocation7], 0  ;;  %s615_s30 = smov [#allocation8]   ;;  %s23_s14 = scalar_lea.hbm %s721_s1, %s720_s0 }
   0x3   :  { %s39_s9 = sshll.u32 %s615_s30, 4  ;;  %s616_s15 = smov 512   ;;  %s40_s9 = int_to_ptr.vmem [resolvable:$true] %s39_s9 }
   0x4   :  { %s617_s16 = smov 32   ;;  %s25_s17 = sshll.u32 %s23_s14, 4  ;;  %s26_s17 = int_to_ptr.hbm [resolvable:$true] %s25_s17 }
   0x5   :  { %45 = dma.hbm_to_vmem [thread:$0]  %s38_s29, 16384, %s40_s9, [#allocation9], %s616_s15, %s616_s15, %s617_s16  }
   0x6   :  { %s618_s18 = smov [#allocation5]   ;;  %s52_s21 = sshll.u32 %s725_s5, 4  ;;  %s53_s21 = int_to_ptr.hbm [resolvable:$true] %s52_s21 }
   0x7   :  { %s27_s19 = sshll.u32 %s618_s18, 4  ;;  %s537_s22 = sshra.s32 %s26_s17, 4  ;;  %s28_s19 = int_to_ptr.vmem [resolvable:$true] %s27_s19  ;;  %s538_s22 = int_to_ptr.hbm [resolvable:$true] %s537_s22 }
   0x8   :  { %s539_s23 = scalar_lea.hbm %s538_s22, 1  ;;  %s541_s0 = scalar_lea.hbm %s721_s1, 64 }
   0x9   :  { %p540_p0 = scmp.ne.s32.totalorder %s538_s22, %s539_s23  ;;  %p542_p1 = scmp.lt.s32.totalorder %s538_s22, %s721_s1 }
   0xa   :  { %p543_p2 = scmp.lt.s32.totalorder %s541_s0, %s539_s23 }
   0xc   :  { %p544_p3 = por %p543_p2, %p542_p1 }
   0xe   :  { %p545_p4 = pnand %p544_p3, %p540_p0 }
  0x10   :  { %548 = shalt.err (!%p545_p4)
}
  0x11   :  { %30 = dma.hbm_to_vmem [thread:$0]  %s26_s17, 16, %s28_s19, [#allocation6]  }
  0x12   :  { %s619_s28 = smov [#allocation10]   ;;  %s620_s29 = smov 128  }
  0x13   :  { %s54_s5 = sshll.u32 %s619_s28, 4  ;;  %s621_s30 = smov 8   ;;  %s55_s5 = int_to_ptr.vmem [resolvable:$true] %s54_s5 }
  0x14   :  { %60 = dma.hbm_to_vmem [thread:$0]  %s53_s21, 2048, %s55_s5, [#allocation9], %s620_s29, %s620_s29, %s621_s30  }
  0x15   :  { %609 = dma.done.wait [#allocation6], 16  }
  0x16   :  { %610 = vsyncadd [#allocation6], 4294967280 }
  0x17   :  { %611 = dma.done.wait [#allocation9], 18432  }
  0x18   :  { %612 = vsyncadd [#allocation9], 4294948864  ;;  %v144_v0 = vld [vmem:[#allocation8 + $0x1e0] sm:$0xff]  ;;  %v145_v1 = vld [vmem:[#allocation8 + $0x1e8] sm:$0xff]  ;;  %s622_s14 = smov [#allocation11]   ;;  %s477_s18 = sshll.u32 %s727_s7, 4  ;;  %s478_s18 = int_to_ptr.hbm [resolvable:$true] %s477_s18 }
  0x19   :  { %v140_v2 = vld [vmem:[#allocation8 + $0x1c0] sm:$0xff]  ;;  %222 = vmatpush.msra.mxu0 %v144_v0  ;;  %262 = vmatpush.msra.mxu2 %v145_v1  ;;  %v141_v4 = vld [vmem:[#allocation8 + $0x1c8] sm:$0xff]  ;;  %v80_v50 = vld [vmem:[%s722_s2] sm:$0x1]  ;;  %s475_s15 = sshll.u32 %s622_s14, 4  ;;  %s476_s15 = int_to_ptr.vmem [resolvable:$true] %s475_s15 }
  0x1a   :  { %v208_v3 = vld [vmem:[#allocation8 + $0x3e0] sm:$0xff]  ;;  %v209_v5 = vld [vmem:[#allocation8 + $0x3e8] sm:$0xff]  ;;  %81 = vst [vmem:[#allocation2] sm:$0x1] %v80_v50  ;;  %v689_v63 = vld [vmem:[#allocation5] sm:$0x1] }
  0x1b   :  { %242 = vmatpush.msra.mxu1 %v208_v3  ;;  %282 = vmatpush.msra.mxu3 %v209_v5  ;;  %v136_v6 = vld [vmem:[#allocation8 + $0x1a0] sm:$0xff]  ;;  %v137_v8 = vld [vmem:[#allocation8 + $0x1a8] sm:$0xff]  ;;  %v147_v0 = vld [vmem:[#allocation8 + $0x1f8] sm:$0xff] }
  0x1c   :  { %v204_v7 = vld [vmem:[#allocation8 + $0x3c0] sm:$0xff]  ;;  %223 = vmatpush.msra.mxu0 %v140_v2  ;;  %263 = vmatpush.msra.mxu2 %v141_v4  ;;  %v205_v9 = vld [vmem:[#allocation8 + $0x3c8] sm:$0xff]  ;;  %v143_v4 = vld [vmem:[#allocation8 + $0x1d8] sm:$0xff] }
  0x1d   :  { %v200_v10 = vld [vmem:[#allocation8 + $0x3a0] sm:$0xff]  ;;  %243 = vmatpush.msra.mxu1 %v204_v7  ;;  %283 = vmatpush.msra.mxu3 %v205_v9  ;;  %v133_v12 = vld [vmem:[#allocation8 + $0x188] sm:$0xff]  ;;  %v211_v5 = vld [vmem:[#allocation8 + $0x3f8] sm:$0xff] }
  0x1e   :  { %v132_v11 = vld [vmem:[#allocation8 + $0x180] sm:$0xff]  ;;  %v201_v13 = vld [vmem:[#allocation8 + $0x3a8] sm:$0xff]  ;;  %224 = vmatpush.msra.mxu0 %v136_v6  ;;  %264 = vmatpush.msra.mxu2 %v137_v8  ;;  %v146_v6 = vld [vmem:[#allocation8 + $0x1f0] sm:$0xff] }
  0x1f   :  { %v196_v14 = vld [vmem:[#allocation8 + $0x380] sm:$0xff]  ;;  %v197_v15 = vld [vmem:[#allocation8 + $0x388] sm:$0xff]  ;;  %244 = vmatpush.msra.mxu1 %v200_v10  ;;  %284 = vmatpush.msra.mxu3 %v201_v13  ;;  %v139_v7 = vld [vmem:[#allocation8 + $0x1b8] sm:$0xff] }
  0x20   :  { %v128_v16 = vld [vmem:[#allocation8 + $0x160] sm:$0xff]  ;;  %v129_v17 = vld [vmem:[#allocation8 + $0x168] sm:$0xff]  ;;  %225 = vmatpush.msra.mxu0 %v132_v11  ;;  %265 = vmatpush.msra.mxu2 %v133_v12  ;;  %v210_v8 = vld [vmem:[#allocation8 + $0x3f0] sm:$0xff] }
  0x21   :  { %v192_v18 = vld [vmem:[#allocation8 + $0x360] sm:$0xff]  ;;  %v193_v19 = vld [vmem:[#allocation8 + $0x368] sm:$0xff]  ;;  %245 = vmatpush.msra.mxu1 %v196_v14  ;;  %285 = vmatpush.msra.mxu3 %v197_v15  ;;  %v691_v3 = vld [vmem:[#allocation2] sm:$0x1] }
  0x22   :  { %v124_v20 = vld [vmem:[#allocation8 + $0x140] sm:$0xff]  ;;  %v125_v21 = vld [vmem:[#allocation8 + $0x148] sm:$0xff]  ;;  %226 = vmatpush.msra.mxu0 %v128_v16  ;;  %266 = vmatpush.msra.mxu2 %v129_v17  ;;  %v207_v9 = vld [vmem:[#allocation8 + $0x3d8] sm:$0xff] }
  0x23   :  { %v188_v22 = vld [vmem:[#allocation8 + $0x340] sm:$0xff]  ;;  %v189_v23 = vld [vmem:[#allocation8 + $0x348] sm:$0xff]  ;;  %246 = vmatpush.msra.mxu1 %v192_v18  ;;  %286 = vmatpush.msra.mxu3 %v193_v19  ;;  %v142_v10 = vld [vmem:[#allocation8 + $0x1d0] sm:$0xff] }
  0x24   :  { %v120_v24 = vld [vmem:[#allocation8 + $0x120] sm:$0xff]  ;;  %v121_v25 = vld [vmem:[#allocation8 + $0x128] sm:$0xff]  ;;  %227 = vmatpush.msra.mxu0 %v124_v20  ;;  %267 = vmatpush.msra.mxu2 %v125_v21  ;;  %v135_v11 = vld [vmem:[#allocation8 + $0x198] sm:$0xff] }
  0x25   :  { %v184_v26 = vld [vmem:[#allocation8 + $0x320] sm:$0xff]  ;;  %v185_v27 = vld [vmem:[#allocation8 + $0x328] sm:$0xff]  ;;  %247 = vmatpush.msra.mxu1 %v188_v22  ;;  %287 = vmatpush.msra.mxu3 %v189_v23  ;;  %v206_v12 = vld [vmem:[#allocation8 + $0x3d0] sm:$0xff] }
  0x26   :  { %v116_v28 = vld [vmem:[#allocation8 + $0x100] sm:$0xff]  ;;  %v117_v29 = vld [vmem:[#allocation8 + $0x108] sm:$0xff]  ;;  %228 = vmatpush.msra.mxu0 %v120_v24  ;;  %268 = vmatpush.msra.mxu2 %v121_v25  ;;  %v203_v13 = vld [vmem:[#allocation8 + $0x3b8] sm:$0xff] }
  0x27   :  { %v180_v30 = vld [vmem:[#allocation8 + $0x300] sm:$0xff]  ;;  %v181_v31 = vld [vmem:[#allocation8 + $0x308] sm:$0xff]  ;;  %248 = vmatpush.msra.mxu1 %v184_v26  ;;  %288 = vmatpush.msra.mxu3 %v185_v27  ;;  %v138_v14 = vld [vmem:[#allocation8 + $0x1b0] sm:$0xff] }
  0x28   :  { %v112_v32 = vld [vmem:[#allocation8 + $0xe0] sm:$0xff]  ;;  %v113_v33 = vld [vmem:[#allocation8 + $0xe8] sm:$0xff]  ;;  %229 = vmatpush.msra.mxu0 %v116_v28  ;;  %269 = vmatpush.msra.mxu2 %v117_v29  ;;  %v131_v15 = vld [vmem:[#allocation8 + $0x178] sm:$0xff] }
  0x29   :  { %v176_v34 = vld [vmem:[#allocation8 + $0x2e0] sm:$0xff]  ;;  %v177_v35 = vld [vmem:[#allocation8 + $0x2e8] sm:$0xff]  ;;  %249 = vmatpush.msra.mxu1 %v180_v30  ;;  %289 = vmatpush.msra.mxu3 %v181_v31  ;;  %v202_v16 = vld [vmem:[#allocation8 + $0x3b0] sm:$0xff] }
  0x2a   :  { %v108_v36 = vld [vmem:[#allocation8 + $0xc0] sm:$0xff]  ;;  %v109_v37 = vld [vmem:[#allocation8 + $0xc8] sm:$0xff]  ;;  %230 = vmatpush.msra.mxu0 %v112_v32  ;;  %270 = vmatpush.msra.mxu2 %v113_v33  ;;  %v199_v17 = vld [vmem:[#allocation8 + $0x398] sm:$0xff] }
  0x2b   :  { %v172_v38 = vld [vmem:[#allocation8 + $0x2c0] sm:$0xff]  ;;  %v173_v39 = vld [vmem:[#allocation8 + $0x2c8] sm:$0xff]  ;;  %250 = vmatpush.msra.mxu1 %v176_v34  ;;  %290 = vmatpush.msra.mxu3 %v177_v35  ;;  %v134_v18 = vld [vmem:[#allocation8 + $0x190] sm:$0xff] }
  0x2c   :  { %v104_v40 = vld [vmem:[#allocation8 + $0xa0] sm:$0xff]  ;;  %v105_v41 = vld [vmem:[#allocation8 + $0xa8] sm:$0xff]  ;;  %231 = vmatpush.msra.mxu0 %v108_v36  ;;  %271 = vmatpush.msra.mxu2 %v109_v37  ;;  %v127_v19 = vld [vmem:[#allocation8 + $0x158] sm:$0xff] }
  0x2d   :  { %v168_v42 = vld [vmem:[#allocation8 + $0x2a0] sm:$0xff]  ;;  %v169_v43 = vld [vmem:[#allocation8 + $0x2a8] sm:$0xff]  ;;  %251 = vmatpush.msra.mxu1 %v172_v38  ;;  %291 = vmatpush.msra.mxu3 %v173_v39  ;;  %v198_v20 = vld [vmem:[#allocation8 + $0x390] sm:$0xff] }
  0x2e   :  { %v100_v44 = vld [vmem:[#allocation8 + $0x80] sm:$0xff]  ;;  %v101_v45 = vld [vmem:[#allocation8 + $0x88] sm:$0xff]  ;;  %232 = vmatpush.msra.mxu0 %v104_v40  ;;  %272 = vmatpush.msra.mxu2 %v105_v41  ;;  %v195_v21 = vld [vmem:[#allocation8 + $0x378] sm:$0xff] }
  0x2f   :  { %v164_v46 = vld [vmem:[#allocation8 + $0x280] sm:$0xff]  ;;  %v165_v47 = vld [vmem:[#allocation8 + $0x288] sm:$0xff]  ;;  %252 = vmatpush.msra.mxu1 %v168_v42  ;;  %292 = vmatpush.msra.mxu3 %v169_v43  ;;  %v130_v22 = vld [vmem:[#allocation8 + $0x170] sm:$0xff] }
  0x30   :  { %v96_v48 = vld [vmem:[#allocation8 + $0x60] sm:$0xff]  ;;  %v97_v49 = vld [vmem:[#allocation8 + $0x68] sm:$0xff]  ;;  %233 = vmatpush.msra.mxu0 %v100_v44  ;;  %273 = vmatpush.msra.mxu2 %v101_v45  ;;  %v123_v23 = vld [vmem:[#allocation8 + $0x138] sm:$0xff] }
  0x31   :  { %v160_v51 = vld [vmem:[#allocation8 + $0x260] sm:$0xff]  ;;  %v161_v52 = vld [vmem:[#allocation8 + $0x268] sm:$0xff]  ;;  %253 = vmatpush.msra.mxu1 %v164_v46  ;;  %293 = vmatpush.msra.mxu3 %v165_v47  ;;  %v194_v24 = vld [vmem:[#allocation8 + $0x370] sm:$0xff] }
  0x32   :  { %v92_v53 = vld [vmem:[#allocation8 + $0x40] sm:$0xff]  ;;  %v93_v54 = vld [vmem:[#allocation8 + $0x48] sm:$0xff]  ;;  %234 = vmatpush.msra.mxu0 %v96_v48  ;;  %274 = vmatpush.msra.mxu2 %v97_v49  ;;  %v191_v25 = vld [vmem:[#allocation8 + $0x358] sm:$0xff] }
  0x33   :  { %v156_v55 = vld [vmem:[#allocation8 + $0x240] sm:$0xff]  ;;  %v157_v56 = vld [vmem:[#allocation8 + $0x248] sm:$0xff]  ;;  %254 = vmatpush.msra.mxu1 %v160_v51  ;;  %294 = vmatpush.msra.mxu3 %v161_v52  ;;  %v126_v26 = vld [vmem:[#allocation8 + $0x150] sm:$0xff] }
  0x34   :  { %v88_v57 = vld [vmem:[#allocation8 + $0x20] sm:$0xff]  ;;  %v89_v58 = vld [vmem:[#allocation8 + $0x28] sm:$0xff]  ;;  %235 = vmatpush.msra.mxu0 %v92_v53  ;;  %275 = vmatpush.msra.mxu2 %v93_v54  ;;  %v119_v27 = vld [vmem:[#allocation8 + $0x118] sm:$0xff] }
  0x35   :  { %v152_v59 = vld [vmem:[#allocation8 + $0x220] sm:$0xff]  ;;  %v153_v60 = vld [vmem:[#allocation8 + $0x228] sm:$0xff]  ;;  %255 = vmatpush.msra.mxu1 %v156_v55  ;;  %295 = vmatpush.msra.mxu3 %v157_v56  ;;  %v190_v28 = vld [vmem:[#allocation8 + $0x350] sm:$0xff] }
  0x36   :  { %v84_v61 = vld [vmem:[#allocation8] sm:$0xff]  ;;  %v85_v62 = vld [vmem:[#allocation8 + $0x8] sm:$0xff]  ;;  %236 = vmatpush.msra.mxu0 %v88_v57  ;;  %276 = vmatpush.msra.mxu2 %v89_v58  ;;  %v187_v29 = vld [vmem:[#allocation8 + $0x338] sm:$0xff] }
  0x37   :  { %256 = vmatpush.msra.mxu1 %v152_v59  ;;  %296 = vmatpush.msra.mxu3 %v153_v60  ;;  %v148_v1 = vld [vmem:[#allocation8 + $0x200] sm:$0xff]  ;;  %v149_v2 = vld [vmem:[#allocation8 + $0x208] sm:$0xff]  ;;  %v122_v30 = vld [vmem:[#allocation8 + $0x130] sm:$0xff] }
  0x38   :  { %237 = vmatpush.msra.mxu0 %v84_v61  ;;  %277 = vmatpush.msra.mxu2 %v85_v62  ;;  %v115_v31 = vld [vmem:[#allocation8 + $0xf8] sm:$0xff]  ;;  %v186_v32 = vld [vmem:[#allocation8 + $0x330] sm:$0xff] }
  0x39   :  { %238 = vmatmul.f32.vlgmr.msra.gmra.mxu0 %v689_v63  ;;  %278 = vmatmul.f32.vlgmr.msra.gmra.mxu2 %v689_v63  ;;  %v183_v33 = vld [vmem:[#allocation8 + $0x318] sm:$0xff]  ;;  %v118_v34 = vld [vmem:[#allocation8 + $0x110] sm:$0xff] }
  0x3a   :  { %342 = vmatpush.msrb.mxu2 %v147_v0  ;;  %257 = vmatpush.msra.mxu1 %v148_v1  ;;  %v111_v35 = vld [vmem:[#allocation8 + $0xd8] sm:$0xff]  ;;  %v182_v36 = vld [vmem:[#allocation8 + $0x310] sm:$0xff] }
  0x3b   :  { %297 = vmatpush.msra.mxu3 %v149_v2  ;;  %258 = vmatmul.f32.vlgmr.msra.gmra.mxu1 %v691_v3  ;;  %v179_v37 = vld [vmem:[#allocation8 + $0x2f8] sm:$0xff]  ;;  %v114_v38 = vld [vmem:[#allocation8 + $0xf0] sm:$0xff] }
  0x3c   :  { %298 = vmatmul.f32.vlgmr.msra.gmra.mxu3 %v691_v3  ;;  %343 = vmatpush.msrb.mxu2 %v143_v4  ;;  %v107_v39 = vld [vmem:[#allocation8 + $0xb8] sm:$0xff]  ;;  %v178_v40 = vld [vmem:[#allocation8 + $0x2f0] sm:$0xff] }
  0x3d   :  { %362 = vmatpush.msrb.mxu3 %v211_v5  ;;  %302 = vmatpush.msrb.mxu0 %v146_v6  ;;  %v175_v41 = vld [vmem:[#allocation8 + $0x2d8] sm:$0xff]  ;;  %v110_v42 = vld [vmem:[#allocation8 + $0xd0] sm:$0xff] }
  0x3e   :  { %344 = vmatpush.msrb.mxu2 %v139_v7  ;;  %322 = vmatpush.msrb.mxu1 %v210_v8  ;;  %v103_v43 = vld [vmem:[#allocation8 + $0x98] sm:$0xff]  ;;  %v174_v44 = vld [vmem:[#allocation8 + $0x2d0] sm:$0xff] }
  0x3f   :  { %363 = vmatpush.msrb.mxu3 %v207_v9  ;;  %303 = vmatpush.msrb.mxu0 %v142_v10  ;;  %v171_v45 = vld [vmem:[#allocation8 + $0x2b8] sm:$0xff]  ;;  %v106_v46 = vld [vmem:[#allocation8 + $0xb0] sm:$0xff]  ;;  %v441_v9 = vld [vmem:[#allocation10 + $0x68] sm:$0xff] }
  0x40   :  { %345 = vmatpush.msrb.mxu2 %v135_v11  ;;  %323 = vmatpush.msrb.mxu1 %v206_v12  ;;  %v99_v47 = vld [vmem:[#allocation8 + $0x78] sm:$0xff]  ;;  %v170_v48 = vld [vmem:[#allocation8 + $0x2b0] sm:$0xff]  ;;  %v440_v12 = vld [vmem:[#allocation10 + $0x60] sm:$0xff] }
  0x41   :  { %364 = vmatpush.msrb.mxu3 %v203_v13  ;;  %304 = vmatpush.msrb.mxu0 %v138_v14  ;;  %v167_v49 = vld [vmem:[#allocation8 + $0x298] sm:$0xff]  ;;  %v102_v50 = vld [vmem:[#allocation8 + $0x90] sm:$0xff] }
  0x42   :  { %346 = vmatpush.msrb.mxu2 %v131_v15  ;;  %324 = vmatpush.msrb.mxu1 %v202_v16  ;;  %v95_v51 = vld [vmem:[#allocation8 + $0x58] sm:$0xff]  ;;  %v166_v52 = vld [vmem:[#allocation8 + $0x290] sm:$0xff] }
  0x43   :  { %365 = vmatpush.msrb.mxu3 %v199_v17  ;;  %305 = vmatpush.msrb.mxu0 %v134_v18  ;;  %v163_v53 = vld [vmem:[#allocation8 + $0x278] sm:$0xff]  ;;  %v98_v54 = vld [vmem:[#allocation8 + $0x70] sm:$0xff] }
  0x44   :  { %347 = vmatpush.msrb.mxu2 %v127_v19  ;;  %325 = vmatpush.msrb.mxu1 %v198_v20  ;;  %v91_v55 = vld [vmem:[#allocation8 + $0x38] sm:$0xff]  ;;  %v162_v56 = vld [vmem:[#allocation8 + $0x270] sm:$0xff]  ;;  %v437_v20 = vld [vmem:[#allocation10 + $0x48] sm:$0xff] }
  0x45   :  { %366 = vmatpush.msrb.mxu3 %v195_v21  ;;  %306 = vmatpush.msrb.mxu0 %v130_v22  ;;  %v159_v57 = vld [vmem:[#allocation8 + $0x258] sm:$0xff]  ;;  %v94_v58 = vld [vmem:[#allocation8 + $0x50] sm:$0xff]  ;;  %v436_v22 = vld [vmem:[#allocation10 + $0x40] sm:$0xff] }
  0x46   :  { %348 = vmatpush.msrb.mxu2 %v123_v23  ;;  %326 = vmatpush.msrb.mxu1 %v194_v24  ;;  %v87_v59 = vld [vmem:[#allocation8 + $0x18] sm:$0xff]  ;;  %v158_v60 = vld [vmem:[#allocation8 + $0x250] sm:$0xff] }
  0x47   :  { %367 = vmatpush.msrb.mxu3 %v191_v25  ;;  %307 = vmatpush.msrb.mxu0 %v126_v26  ;;  %v155_v61 = vld [vmem:[#allocation8 + $0x238] sm:$0xff]  ;;  %v90_v62 = vld [vmem:[#allocation8 + $0x30] sm:$0xff] }
  0x48   :  { %349 = vmatpush.msrb.mxu2 %v119_v27  ;;  %327 = vmatpush.msrb.mxu1 %v190_v28  ;;  %v154_v0 = vld [vmem:[#allocation8 + $0x230] sm:$0xff]  ;;  %v151_v1 = vld [vmem:[#allocation8 + $0x218] sm:$0xff] }
  0x49   :  { %368 = vmatpush.msrb.mxu3 %v187_v29  ;;  %308 = vmatpush.msrb.mxu0 %v122_v30  ;;  %v86_v2 = vld [vmem:[#allocation8 + $0x10] sm:$0xff]  ;;  %v704_v5 = vld [vmem:[%s724_s4] sm:$0xf]  ;;  %v433_v29 = vld [vmem:[#allocation10 + $0x28] sm:$0xff] }
  0x4a   :  { %350 = vmatpush.msrb.mxu2 %v115_v31  ;;  %328 = vmatpush.msrb.mxu1 %v186_v32  ;;  %v150_v4 = vld [vmem:[#allocation8 + $0x210] sm:$0xff]  ;;  %v443_v6 = vld [vmem:[#allocation10 + $0x78] sm:$0xff]  ;;  %v214_v7 = vperm.slane %v704_v5, 0  ;;  %v215_v15 = vperm.slane %v704_v5, 1  ;;  %v432_v30 = vld [vmem:[#allocation10 + $0x20] sm:$0xff] }
  0x4b   :  { %369 = vmatpush.msrb.mxu3 %v183_v33  ;;  %309 = vmatpush.msrb.mxu0 %v118_v34  ;;  %v442_v8 = vld [vmem:[#allocation10 + $0x70] sm:$0xff]  ;;  %v439_v13 = vld [vmem:[#allocation10 + $0x58] sm:$0xff] }
  0x4c   :  { %351 = vmatpush.msrb.mxu2 %v111_v35  ;;  %329 = vmatpush.msrb.mxu1 %v182_v36  ;;  %v438_v16 = vld [vmem:[#allocation10 + $0x50] sm:$0xff]  ;;  %v435_v24 = vld [vmem:[#allocation10 + $0x38] sm:$0xff]  ;;  %v429_v35 = vld [vmem:[#allocation10 + $0x8] sm:$0xff] }
  0x4d   :  { %370 = vmatpush.msrb.mxu3 %v179_v37  ;;  %310 = vmatpush.msrb.mxu0 %v114_v38  ;;  %v434_v27 = vld [vmem:[#allocation10 + $0x30] sm:$0xff]  ;;  %v431_v31 = vld [vmem:[#allocation10 + $0x18] sm:$0xff]  ;;  %v428_v37 = vld [vmem:[#allocation10] sm:$0xff] }
  0x4e   :  { %352 = vmatpush.msrb.mxu2 %v107_v39  ;;  %330 = vmatpush.msrb.mxu1 %v178_v40  ;;  %v430_v32 = vld [vmem:[#allocation10 + $0x10] sm:$0xff] }
  0x4f   :  { %371 = vmatpush.msrb.mxu3 %v175_v41  ;;  %311 = vmatpush.msrb.mxu0 %v110_v42 }
  0x50   :  { %353 = vmatpush.msrb.mxu2 %v103_v43  ;;  %331 = vmatpush.msrb.mxu1 %v174_v44  ;;  %v216_v43 = vperm.slane %v704_v5, 2 }
  0x51   :  { %372 = vmatpush.msrb.mxu3 %v171_v45  ;;  %312 = vmatpush.msrb.mxu0 %v106_v46  ;;  %v217_v45 = vperm.slane %v704_v5, 3 }
  0x52   :  { %354 = vmatpush.msrb.mxu2 %v99_v47  ;;  %332 = vmatpush.msrb.mxu1 %v170_v48 }
  0x53   :  { %373 = vmatpush.msrb.mxu3 %v167_v49  ;;  %313 = vmatpush.msrb.mxu0 %v102_v50 }
  0x54   :  { %355 = vmatpush.msrb.mxu2 %v95_v51  ;;  %333 = vmatpush.msrb.mxu1 %v166_v52 }
  0x55   :  { %374 = vmatpush.msrb.mxu3 %v163_v53  ;;  %314 = vmatpush.msrb.mxu0 %v98_v54 }
  0x56   :  { %356 = vmatpush.msrb.mxu2 %v91_v55  ;;  %334 = vmatpush.msrb.mxu1 %v162_v56 }
  0x57   :  { %375 = vmatpush.msrb.mxu3 %v159_v57  ;;  %315 = vmatpush.msrb.mxu0 %v94_v58 }
  0x58   :  { %357 = vmatpush.msrb.mxu2 %v87_v59  ;;  %335 = vmatpush.msrb.mxu1 %v158_v60 }
  0x59   :  { %376 = vmatpush.msrb.mxu3 %v155_v61  ;;  %358 = vmatmul.f32.vlgmr.msrb.gmra.mxu2 %v689_v63 }
  0x5a   :  { %316 = vmatpush.msrb.mxu0 %v90_v62  ;;  %336 = vmatpush.msrb.mxu1 %v154_v0 }
  0x5b   :  { %377 = vmatpush.msrb.mxu3 %v151_v1 }
  0x5c   :  { %378 = vmatmul.f32.vlgmr.msrb.gmra.mxu3 %v691_v3  ;;  %317 = vmatpush.msrb.mxu0 %v86_v2 }
  0x5d   :  { %318 = vmatmul.f32.vlgmr.msrb.gmra.mxu0 %v689_v63  ;;  %337 = vmatpush.msrb.mxu1 %v150_v4 }
  0x5e   :  { %338 = vmatmul.f32.vlgmr.msrb.gmra.mxu1 %v691_v3  ;;  %445 = vmatpush.msra.mxu0 %v443_v6 }
  0x60   :  { %446 = vmatpush.msra.mxu0 %v442_v8 }
  0x62   :  { %447 = vmatpush.msra.mxu0 %v441_v9 }
  0x64   :  { %448 = vmatpush.msra.mxu0 %v440_v12  ;;  %v444_v12 = vld [vmem:[%s726_s6] sm:$0x1] }
  0x66   :  { %449 = vmatpush.msra.mxu0 %v439_v13 }
  0x68   :  { %450 = vmatpush.msra.mxu0 %v438_v16 }
  0x6a   :  { %451 = vmatpush.msra.mxu0 %v437_v20 }
  0x6c   :  { %452 = vmatpush.msra.mxu0 %v436_v22 }
  0x6e   :  { %453 = vmatpush.msra.mxu0 %v435_v24 }
  0x70   :  { %454 = vmatpush.msra.mxu0 %v434_v27 }
  0x72   :  { %455 = vmatpush.msra.mxu0 %v433_v29 }
  0x74   :  { %456 = vmatpush.msra.mxu0 %v432_v30 }
  0x76   :  { %457 = vmatpush.msra.mxu0 %v431_v31 }
  0x78   :  { %458 = vmatpush.msra.mxu0 %v430_v32 }
  0x7a   :  { %459 = vmatpush.msra.mxu0 %v429_v35 }
  0x7c   :  { %460 = vmatpush.msra.mxu0 %v428_v37 }
  0xb6   :  { %v239_v10 = vpop.f32.mrf.mxu0 }
  0xb7   :  { %v240_v11 = vadd.f32 %v239_v10, %v214_v7 }
  0xb8   :  { %v259_v63 = vpop.f32.mrf.mxu1 }
  0xb9   :  { %v260_v14 = vadd.f32 %v259_v63, %v240_v11 }
  0xbb   :  { %v493_v17 = vmul.f32 -1.442695, %v260_v14 }
  0xbc   :  { %v279_v18 = vpop.f32.mrf.mxu2 }
  0xbd   :  { %503 = vpow2.f32 %v493_v17  ;;  %v280_v19 = vadd.f32 %v279_v18, %v215_v15 }
  0xbf   :  { %v299_v21 = vpop.f32.mrf.mxu3 }
  0xc0   :  { %v300_v23 = vadd.f32 %v299_v21, %v280_v19 }
  0xc2   :  { %v494_v25 = vmul.f32 -1.442695, %v300_v23 }
  0xc3   :  { %v504_v26 = vpop.eup %503 }
  0xc4   :  { %v385_v28 = vadd.f32 1.0, %v504_v26  ;;  %505 = vpow2.f32 %v494_v25 }
  0xc6   :  { %507 = vrcp.f32 %v385_v28  ;;  %vm391_vm0 = vweird.f32 %v385_v28  ;;  %v397_v48 = vand.u32 2147483648, %v385_v28  ;;  %v395_v51 = vand.u32 2147483647, %v385_v28 }
  0xc8   :  { %v398_v57 = vor.u32 1.1754944e-38, %v397_v48  ;;  %vm396_vm5 = vcmp.eq.f32.partialorder %v395_v51, 8.507059e+37 }
  0xca   :  { %v506_v33 = vpop.eup %505 }
  0xcb   :  { %v404_v34 = vadd.f32 1.0, %v506_v33 }
  0xcc   :  { %v508_v36 = vpop.eup %507 }
  0xcd   :  { %509 = vrcp.f32 %v404_v34  ;;  %v387_v38 = vmul.f32 %v508_v36, %v385_v28  ;;  %vm392_vm1 = vweird.f32 %v508_v36  ;;  %vm410_vm3 = vweird.f32 %v404_v34 }
  0xce   :  { %vm393_vm2 = vmor %vm391_vm0, %vm392_vm1  ;;  %v416_v60 = vand.u32 2147483648, %v404_v34  ;;  %v414_v0 = vand.u32 2147483647, %v404_v34 }
  0xcf   :  { %v388_v39 = vsub.f32 1.0, %v387_v38 }
  0xd0   :  { %v417_v4 = vor.u32 1.1754944e-38, %v416_v60  ;;  %vm415_vm7 = vcmp.eq.f32.partialorder %v414_v0, 8.507059e+37 }
  0xd1   :  { %v389_v42 = vmul.f32 %v508_v36, %v388_v39 }
  0xd3   :  { %v510_v40 = vpop.eup %509  ;;  %v390_v47 = vadd.f32 %v508_v36, %v389_v42 }
  0xd4   :  { %v406_v41 = vmul.f32 %v510_v40, %v404_v34  ;;  %vm411_vm4 = vweird.f32 %v510_v40 }
  0xd5   :  { %v394_v55 = vsel %vm393_vm2, %v508_v36, %v390_v47  ;;  %vm412_vm6 = vmor %vm410_vm3, %vm411_vm4 }
  0xd6   :  { %v407_v44 = vsub.f32 1.0, %v406_v41  ;;  %v399_v61 = vsel %vm396_vm5, %v398_v57, %v394_v55 }
  0xd8   :  { %v408_v52 = vmul.f32 %v510_v40, %v407_v44 }
  0xda   :  { %v319_v46 = vpop.f32.mrf.mxu0  ;;  %v409_v62 = vadd.f32 %v510_v40, %v408_v52 }
  0xdb   :  { %v320_v50 = vadd.f32 %v319_v46, %v216_v43  ;;  %v339_v54 = vpop.f32.mrf.mxu1 }
  0xdc   :  { %v359_v49 = vpop.f32.mrf.mxu2  ;;  %v413_v5 = vsel %vm412_vm6, %v510_v40, %v409_v62 }
  0xdd   :  { %v360_v53 = vadd.f32 %v359_v49, %v217_v45  ;;  %v340_v59 = vadd.f32 %v339_v54, %v320_v50  ;;  %v418_v6 = vsel %vm415_vm7, %v417_v4, %v413_v5 }
  0xde   :  { %v423_v7 = vsub.f32 1.0, %v418_v6  ;;  %v425_v10 = vmul.f32 %v418_v6, %v691_v3 }
  0xdf   :  { %v379_v56 = vpop.f32.mrf.mxu3 }
  0xe0   :  { %v380_v58 = vadd.f32 %v379_v56, %v360_v53 }
  0xe2   :  { %v420_v1 = vmul.f32 %v399_v61, %v380_v58 }
  0xe4   :  { %v421_v2 = vadd.f32 %v420_v1, %v340_v59 }
  0xe6   :  { %511 = vtanh.f32 %v421_v2 }
  0xec   :  { %v512_v8 = vpop.eup %511 }
  0xed   :  { %v424_v9 = vmul.f32 %v512_v8, %v423_v7 }
  0xef   :  { %v426_v11 = vadd.f32 %v425_v10, %v424_v9 }
  0xf1   :  { %427 = vst [vmem:[#allocation2] sm:$0x1] %v426_v11  ;;  %461 = vmatmul.f32.vlgmr.msra.gmra.mxu0 %v426_v11 }
  0xf2   :  { %469 = vst [vmem:[%s728_s8] sm:$0x1] %v426_v11 }
 0x16e   :  { %v462_v63 = vpop.f32.mrf.mxu0 }
 0x16f   :  { %v463_v13 = vadd.f32 %v462_v63, %v444_v12 }
 0x171   :  { %465 = vst [vmem:[#allocation11] sm:$0x1] %v463_v13 }
 0x172   :  { %480 = dma.vmem_to_hbm [thread:$0]  %s476_s15, 16, %s478_s18, [#allocation7]  }
 0x173   :  { %613 = dma.done.wait [#allocation7], 16  }
 0x174   :  { %614 = vsyncadd [#allocation7], 4294967280 }
 0x175   :  { %489 = vsyncpa [#allocation6], 1 }
 0x176   :  { %490 = vsyncpa [#allocation9], 1 }
 0x177   :  { %491 = vsyncpa [#allocation7], 1 }

</bundles_post_ra>
